<compile_context>
chip_gen: v7x
topology: tpu7x:2x2x1
jax: 0.10.0
libtpu: 0.0.40
codegen_flags: <defaults>
</compile_context>

<pallas_src>
import jax
import jax.numpy as jnp
from jax.experimental import pallas as pl
from jax.experimental.pallas import tpu as pltpu

N_CHANNEL = 1          # reference module value (kernel is specialized to 2*nChannel == 2)
N_NEURONS = 100        # logical hidden width
N_PAD = 128            # lane/sublane-padded hidden width


def _mine_kernel(x_ref, w1_ref, b1_ref, w2_ref, b2_ref, w3_ref, b3_ref, mi_ref):
    """Fused 3-layer MLP + MI reduction, feature-on-sublane / sample-on-lane layout.

    x_ref : (2, 2N)    row 0 = channel-0 values, row 1 = channel-1 values;
                       columns [0, N) are the joint batch, [N, 2N) the marginal batch
    w1_ref: (128, 2)   padded fc1 weight, PyTorch (out, in) layout
    b1_ref: (128, 1)   padded fc1 bias
    w2_ref: (128, 128) padded fc2 weight, PyTorch (out, in) layout
    b2_ref: (128, 1)   padded fc2 bias
    w3_ref: (128, 1)   padded fc3 weight as a sublane column
    b3_ref: (1, 1)     fc3 bias (SMEM scalar)
    mi_ref: (1, 1)     scalar MI output (SMEM)
    """
    x = x_ref[...]                                                  # (2, 2N) f32

    # Layer 1 (K = 2): a rank-2 update on the VPU beats a 2-deep MXU matmul.
    # x rows are lane-dense and broadcast along sublanes (stride-0, cheap).
    h1 = (w1_ref[:, 0:1] * x[0:1, :]
          + w1_ref[:, 1:2] * x[1:2, :]
          + b1_ref[...])                                            # (128, 2N)
    h1 = jnp.maximum(h1, 0.0)

    # Layer 2 on the MXU: exactly one 128x128 weight tile, lane-dense output.
    h2 = jnp.dot(w2_ref[...], h1,
                 preferred_element_type=jnp.float32) + b2_ref[...]  # (128, 2N)
    h2 = jnp.maximum(h2, 0.0)

    # Layer 3: VPU multiply + sublane (XLU) reduce -> lane-dense scores.
    z = jnp.sum(h2 * w3_ref[...], axis=0, keepdims=True) + b3_ref[0, 0]   # (1, 2N)

    n = z.shape[1] // 2
    z1 = z[:, :n]                                                   # joint scores
    z2 = z[:, n:]                                                   # marginal scores

    # Stabilized log-mean-exp (identical to log(mean(exp(z2)))).
    m = jnp.max(z2)
    log_mean_exp = jnp.log(jnp.mean(jnp.exp(z2 - m))) + m
    mi_ref[0, 0] = jnp.mean(z1) - log_mean_exp


def init_params(key):
    """torch.nn.Linear default init: U(-1/sqrt(fan_in), +1/sqrt(fan_in)); (out, in) layout."""
    ks = jax.random.split(key, 6)

    def linear(kw, kb, fan_in, fan_out):
        bound = fan_in ** -0.5
        w = jax.random.uniform(kw, (fan_out, fan_in), jnp.float32, -bound, bound)
        b = jax.random.uniform(kb, (fan_out,), jnp.float32, -bound, bound)
        return w, b

    w1, b1 = linear(ks[0], ks[1], 2 * N_CHANNEL, N_NEURONS)
    w2, b2 = linear(ks[2], ks[3], N_NEURONS, N_NEURONS)
    w3, b3 = linear(ks[4], ks[5], N_NEURONS, 1)
    return (w1, b1, w2, b2, w3, b3)


def pad_params(params):
    """One-time layout prep (call ONCE, outside the per-call path).

    Keeps the PyTorch (out, in) weight layout (the kernel runs with features on
    sublanes) and zero-pads the hidden width 100 -> 128.  Padding is exact: padded
    hidden units have zero weight and zero bias, ReLU(0) = 0, and they feed zero
    weights downstream, so results are bit-identical to the 100-wide MLP.
    """
    w1, b1, w2, b2, w3, b3 = params
    w1p = jnp.zeros((N_PAD, 2 * N_CHANNEL), jnp.float32).at[:N_NEURONS, :].set(w1)
    b1p = jnp.zeros((N_PAD, 1), jnp.float32).at[:N_NEURONS, 0].set(b1)
    w2p = jnp.zeros((N_PAD, N_PAD), jnp.float32).at[:N_NEURONS, :N_NEURONS].set(w2)
    b2p = jnp.zeros((N_PAD, 1), jnp.float32).at[:N_NEURONS, 0].set(b2)
    w3p = jnp.zeros((N_PAD, 1), jnp.float32).at[:N_NEURONS, 0].set(w3[0, :])
    b3s = b3.reshape(1, 1).astype(jnp.float32)
    return (w1p, b1p, w2p, b2p, w3p, b3s)


@jax.jit
def mine_forward(x, ind, padded_params, perm_key):
    """x: (A, B, 2*nChannel) float32, ind: (N,) int32 indices into the flattened x.

    padded_params: output of pad_params() (already device-resident, padded once).
    """
    A, B, C = x.shape
    xf = x.reshape(A * B, C).astype(jnp.float32)

    # The reference runs 500 iterations but overwrites MI each time -> only the final
    # permutation affects the returned value; draw just that one (forward pass only).
    last_key = jax.random.fold_in(perm_key, 499)
    ind_perm = jax.random.permutation(last_key, ind)

    # Build the stacked, transposed batch (2, 2N): columns [0, N) joint, [N, 2N) marginal.
    # Gather/concat glue stays in plain JAX and fuses under jit.
    row0 = jnp.concatenate([xf[ind, 0], xf[ind, 0]])          # channel 0
    row1 = jnp.concatenate([xf[ind, 1], xf[ind_perm, 1]])     # channel 1 (permuted for marginal)
    x12t = jnp.stack([row0, row1], axis=0)                    # (2, 2N)

    n2 = x12t.shape[1]
    cost = pl.CostEstimate(
        flops=2 * N_PAD * N_PAD * n2 + 12 * N_PAD * n2,
        transcendentals=n2 // 2 + 2,
        bytes_accessed=4 * (2 * n2 + N_PAD * N_PAD + 5 * N_PAD + 2),
    )

    vmem = pl.BlockSpec(memory_space=pltpu.MemorySpace.VMEM)
    smem = pl.BlockSpec(memory_space=pltpu.MemorySpace.SMEM)
    mi = pl.pallas_call(
        _mine_kernel,
        out_shape=jax.ShapeDtypeStruct((1, 1), jnp.float32),
        in_specs=[vmem, vmem, vmem, vmem, vmem, vmem, smem],
        out_specs=smem,
        cost_estimate=cost,
    )(x12t, *padded_params)
    return mi[0, 0]


def _reference_forward(x, ind, params, perm_key):
    """Pure-JAX reference of the module's forward (last permutation only)."""
    w1, b1, w2, b2, w3, b3 = params
    A, B, C = x.shape
    xf = x.reshape(A * B, C)
    hi = jax.lax.Precision.HIGHEST

    def mlp(v):
        h = jnp.maximum(jnp.dot(v, w1.T, precision=hi) + b1, 0.0)
        h = jnp.maximum(jnp.dot(h, w2.T, precision=hi) + b2, 0.0)
        return jnp.dot(h, w3.T, precision=hi) + b3

    z1 = mlp(xf[ind, :])
    last_key = jax.random.fold_in(perm_key, 499)
    ind_perm = jax.random.permutation(last_key, ind)
    x2 = jnp.concatenate(
        [xf[ind, 0:N_CHANNEL], xf[ind_perm, N_CHANNEL:2 * N_CHANNEL]], axis=1)
    z2 = mlp(x2)
    return jnp.mean(z1) - jnp.log(jnp.mean(jnp.exp(z2)))


if __name__ == "__main__":
    key = jax.random.PRNGKey(0)
    k_params, k_x, k_ind, k_perm = jax.random.split(key, 4)

    params = init_params(k_params)
    padded = pad_params(params)   # one-time padding, hoisted out of the per-call path

    # Small shapes consistent with the forward: x is (A, B, 2*nChannel) = (4, 64, 2),
    # flattened to 256 rows; ind selects 128 of them.
    A, B = 4, 64
    x = jax.random.normal(k_x, (A, B, 2 * N_CHANNEL), jnp.float32)
    ind = jax.random.permutation(k_ind, jnp.arange(A * B, dtype=jnp.int32))[:128]

    mi = mine_forward(x, ind, padded, k_perm)
    jax.block_until_ready(mi)

    mi_ref = _reference_forward(x, ind, params, k_perm)
    assert mi.shape == () and bool(jnp.isfinite(mi))
    assert bool(jnp.allclose(mi, mi_ref, atol=1e-3, rtol=1e-3)), (mi, mi_ref)
    print("KERNEL_OK")
</pallas_src>

<mosaic_0001>
module attributes {stable_mosaic.version = 11 : i64} {
  func.func @_mine_kernel(%arg0: memref<2x256xf32, #tpu.memory_space<vmem>>, %arg1: memref<128x2xf32, #tpu.memory_space<vmem>>, %arg2: memref<128x1xf32, #tpu.memory_space<vmem>>, %arg3: memref<128x128xf32, #tpu.memory_space<vmem>>, %arg4: memref<128x1xf32, #tpu.memory_space<vmem>>, %arg5: memref<128x1xf32, #tpu.memory_space<vmem>>, %arg6: memref<1x1xf32, #tpu.memory_space<smem>>, %arg7: memref<1x1xf32, #tpu.memory_space<smem>>) attributes {dimension_semantics = [], scalar_prefetch = 0 : i64, scratch_operands = 0 : i64, tpu.core_type = #tpu.core_type<tc>} {
    %c0 = arith.constant 0 : index
    %c0_0 = arith.constant 0 : index
    %0 = vector.load %arg0[%c0, %c0_0] : memref<2x256xf32, #tpu.memory_space<vmem>>, vector<2x256xf32>
    %c0_1 = arith.constant 0 : index
    %c0_2 = arith.constant 0 : index
    %1 = vector.load %arg1[%c0_1, %c0_2] : memref<128x2xf32, #tpu.memory_space<vmem>>, vector<128x1xf32>
    %2 = vector.extract_strided_slice %0 {offsets = [0, 0], sizes = [1, 256], strides = [1, 1]} : vector<2x256xf32> to vector<1x256xf32>
    %3 = vector.broadcast %1 : vector<128x1xf32> to vector<128x256xf32>
    %4 = vector.broadcast %2 : vector<1x256xf32> to vector<128x256xf32>
    %5 = arith.mulf %3, %4 : vector<128x256xf32>
    %c0_3 = arith.constant 0 : index
    %c1 = arith.constant 1 : index
    %6 = vector.load %arg1[%c0_3, %c1] : memref<128x2xf32, #tpu.memory_space<vmem>>, vector<128x1xf32>
    %7 = vector.extract_strided_slice %0 {offsets = [1, 0], sizes = [1, 256], strides = [1, 1]} : vector<2x256xf32> to vector<1x256xf32>
    %8 = vector.broadcast %6 : vector<128x1xf32> to vector<128x256xf32>
    %9 = vector.broadcast %7 : vector<1x256xf32> to vector<128x256xf32>
    %10 = arith.mulf %8, %9 : vector<128x256xf32>
    %11 = arith.addf %5, %10 : vector<128x256xf32>
    %c0_4 = arith.constant 0 : index
    %c0_5 = arith.constant 0 : index
    %12 = vector.load %arg2[%c0_4, %c0_5] : memref<128x1xf32, #tpu.memory_space<vmem>>, vector<128x1xf32>
    %13 = vector.broadcast %12 : vector<128x1xf32> to vector<128x256xf32>
    %14 = arith.addf %11, %13 : vector<128x256xf32>
    %cst = arith.constant 0.000000e+00 : f32
    %15 = vector.broadcast %cst : f32 to vector<128x256xf32>
    %16 = arith.maximumf %14, %15 : vector<128x256xf32>
    %c0_6 = arith.constant 0 : index
    %c0_7 = arith.constant 0 : index
    %17 = vector.load %arg3[%c0_6, %c0_7] : memref<128x128xf32, #tpu.memory_space<vmem>>, vector<128x128xf32>
    %cst_8 = arith.constant dense<0.000000e+00> : vector<128x256xf32>
    %18 = tpu.matmul %17, %16, %cst_8 {dimension_numbers = #tpu.dot_dimension_numbers<[1], [0], [0], [1], [0, 0, 1, 1], [], []>} : vector<128x128xf32>, vector<128x256xf32>, vector<128x256xf32> -> vector<128x256xf32>
    %c0_9 = arith.constant 0 : index
    %c0_10 = arith.constant 0 : index
    %19 = vector.load %arg4[%c0_9, %c0_10] : memref<128x1xf32, #tpu.memory_space<vmem>>, vector<128x1xf32>
    %20 = vector.broadcast %19 : vector<128x1xf32> to vector<128x256xf32>
    %21 = arith.addf %18, %20 : vector<128x256xf32>
    %cst_11 = arith.constant 0.000000e+00 : f32
    %22 = vector.broadcast %cst_11 : f32 to vector<128x256xf32>
    %23 = arith.maximumf %21, %22 : vector<128x256xf32>
    %c0_12 = arith.constant 0 : index
    %c0_13 = arith.constant 0 : index
    %24 = vector.load %arg5[%c0_12, %c0_13] : memref<128x1xf32, #tpu.memory_space<vmem>>, vector<128x1xf32>
    %25 = vector.broadcast %24 : vector<128x1xf32> to vector<128x256xf32>
    %26 = arith.mulf %23, %25 : vector<128x256xf32>
    %cst_14 = arith.constant dense<0.000000e+00> : vector<256xf32>
    %27 = vector.multi_reduction <add>, %26, %cst_14 [0] : vector<128x256xf32> to vector<256xf32>
    %28 = vector.shape_cast %27 : vector<256xf32> to vector<1x256xf32>
    %c0_15 = arith.constant 0 : index
    %c0_16 = arith.constant 0 : index
    %29 = memref.load %arg6[%c0_15, %c0_16] : memref<1x1xf32, #tpu.memory_space<smem>>
    %30 = vector.broadcast %29 : f32 to vector<1x256xf32>
    %31 = arith.addf %28, %30 : vector<1x256xf32>
    %32 = vector.extract_strided_slice %31 {offsets = [0, 0], sizes = [1, 128], strides = [1, 1]} : vector<1x256xf32> to vector<1x128xf32>
    %33 = vector.extract_strided_slice %31 {offsets = [0, 128], sizes = [1, 128], strides = [1, 1]} : vector<1x256xf32> to vector<1x128xf32>
    %34 = vector.shape_cast %33 : vector<1x128xf32> to vector<1x1x128xf32>
    %cst_17 = arith.constant dense<0xFF800000> : vector<1xf32>
    %35 = vector.multi_reduction <maximumf>, %34, %cst_17 [1, 2] : vector<1x1x128xf32> to vector<1xf32>
    %36 = vector.shape_cast %35 : vector<1xf32> to vector<1x1x1xf32>
    %37 = vector.extract %36[0, 0, 0] : f32 from vector<1x1x1xf32>
    %38 = vector.broadcast %37 : f32 to vector<1x128xf32>
    %39 = arith.subf %33, %38 : vector<1x128xf32>
    %40 = math.exp %39 : vector<1x128xf32>
    %41 = vector.shape_cast %40 : vector<1x128xf32> to vector<1x1x128xf32>
    %cst_18 = arith.constant dense<0.000000e+00> : vector<1xf32>
    %42 = vector.multi_reduction <add>, %41, %cst_18 [1, 2] : vector<1x1x128xf32> to vector<1xf32>
    %43 = vector.shape_cast %42 : vector<1xf32> to vector<1x1x1xf32>
    %44 = vector.extract %43[0, 0, 0] : f32 from vector<1x1x1xf32>
    %cst_19 = arith.constant 1.280000e+02 : f32
    %45 = arith.divf %44, %cst_19 : f32
    %46 = math.log %45 : f32
    %47 = arith.addf %46, %37 : f32
    %48 = vector.shape_cast %32 : vector<1x128xf32> to vector<1x1x128xf32>
    %cst_20 = arith.constant dense<0.000000e+00> : vector<1xf32>
    %49 = vector.multi_reduction <add>, %48, %cst_20 [1, 2] : vector<1x1x128xf32> to vector<1xf32>
    %50 = vector.shape_cast %49 : vector<1xf32> to vector<1x1x1xf32>
    %51 = vector.extract %50[0, 0, 0] : f32 from vector<1x1x1xf32>
    %cst_21 = arith.constant 1.280000e+02 : f32
    %52 = arith.divf %51, %cst_21 : f32
    %53 = arith.subf %52, %47 : f32
    %c0_22 = arith.constant 0 : index
    %c0_23 = arith.constant 0 : index
    %54 = memref.load %arg7[%c0_22, %c0_23] : memref<1x1xf32, #tpu.memory_space<smem>>
    memref.store %53, %arg7[%c0_22, %c0_23] : memref<1x1xf32, #tpu.memory_space<smem>>
    return
  }
}

</mosaic_0001>

<bundles_post_ra>
// kernel: mine_forward.3
= control target key start
LH: loop header
LB: loop body
LE: loop exit
PB: predicated region body
PF: predicated region fallthrough
CT: control target
= control target key end

     0   :  { %v1110_v2 = vmov 1   ;;  %v1111_v7 = vmov 0   ;;  %s1678_s0 = inlined_call_operand.vmem [shape: f32[2,256], index: 0, kind: input, shape index: {}]   ;;  %s1679_s1 = inlined_call_operand.vmem [shape: f32[128,2], index: 1, kind: input, shape index: {}]   ;;  %s1680_s2 = inlined_call_operand.vmem [shape: f32[128,1], index: 2, kind: input, shape index: {}]   ;;  %s1681_s3 = inlined_call_operand.vmem [shape: f32[128,128], index: 3, kind: input, shape index: {}]   ;;  %s1682_s4 = inlined_call_operand.vmem [shape: f32[128,1], index: 4, kind: input, shape index: {}]   ;;  %s1683_s5 = inlined_call_operand.vmem [shape: f32[128,1], index: 5, kind: input, shape index: {}]   ;;  %s1684_s6 = inlined_call_operand.<no memory space> [shape: f32[1,1], index: 6, kind: input, shape index: {}]   ;;  %s1685_s7 = inlined_call_operand.hbm [shape: f32[1,1], index: 7, kind: output, shape index: {}]  }
   0x1   :  { %v31_v0 = vld [vmem:[%s1679_s1 + $0x10] sm:$0xff]  ;;  %v29_v1 = vld [vmem:[%s1679_s1] sm:$0xff]  ;;  %1078 = vset.pattern.permute.xlu0 %v1110_v2  ;;  %1076 = vset.pattern.permute.xlu1 %v1110_v2  ;;  %v30_v4 = vld [vmem:[%s1679_s1 + $0x8] sm:$0xff] }
   0x2   :  { %185 = vperm.xlu0 %1078, %v31_v0   ;;  %177 = vperm.xlu1 %1076, %v29_v1   ;;  %v33_v3 = vld [vmem:[%s1679_s1 + $0x20] sm:$0xff]  ;;  %v35_v5 = vld [vmem:[%s1679_s1 + $0x30] sm:$0xff]  ;;  %v32_v6 = vld [vmem:[%s1679_s1 + $0x18] sm:$0xff] }
   0x3   :  { %v37_v8 = vld [vmem:[%s1679_s1 + $0x40] sm:$0xff]  ;;  %v39_v9 = vld [vmem:[%s1679_s1 + $0x50] sm:$0xff] }
   0x6   :  { %193 = vperm.xlu0 %1078, %v33_v3   ;;  %181 = vperm.xlu1 %1076, %v30_v4  }
   0xa   :  { %201 = vperm.xlu0 %1078, %v35_v5   ;;  %1077 = vset.pattern.permute.xlu1 %v1111_v7 }
   0xb   :  { %62 = vperm.xlu1 %1077, %v32_v6  }
   0xe   :  { %209 = vperm.xlu0 %1078, %v37_v8  }
   0xf   :  { %1079 = vset.pattern.permute.xlu1 %v1110_v2 }
  0x10   :  { %189 = vperm.xlu1 %1079, %v32_v6  }
  0x11   :  { %13 = vsyncpa [#allocation4], 0  ;;  %v322_v10 = vld [vmem:[%s1680_s2] sm:$0xff]  ;;  %v1195_v12 = vld [vmem:[%s1679_s1 + $0x70] sm:$0xff]  ;;  %v126_v60 = vlaneseq  ;;  %v1112_v62 = vmov 0.0   ;;  %vm968_vm0 = vcmask 1040384  }
  0x12   :  { %217 = vperm.xlu0 %1078, %v39_v9   ;;  %v1188_v11 = vld [vmem:[%s1679_s1 + $0x60] sm:$0xff]  ;;  %v34_v13 = vld [vmem:[%s1679_s1 + $0x28] sm:$0xff]  ;;  %v324_v14 = vld [vmem:[%s1680_s2 + $0x10] sm:$0xff]  ;;  %658 = vmatprep.mubr.f32.mxu0 %v1112_v62  ;;  %s1098_s21 = scalar_lea.hbm %s1685_s7, 16 }
  0x13   :  { %v323_v15 = vld [vmem:[%s1680_s2 + $0x8] sm:$0xff]  ;;  %v325_v16 = vld [vmem:[%s1680_s2 + $0x18] sm:$0xff]  ;;  %v326_v20 = vld [vmem:[%s1680_s2 + $0x20] sm:$0xff]  ;;  %706 = vmatprep.mubr.f32.mxu1 %v1112_v62  ;;  %p1099_p0 = scmp.ne.s32.totalorder %s1685_s7, %s1098_s21  ;;  %p1102_p1 = scmp.lt.u32.totalorder %s1098_s21, %s1685_s7 }
  0x14   :  { %1080 = vset.pattern.permute.xlu1 %v1111_v7  ;;  %v36_v17 = vld [vmem:[%s1679_s1 + $0x38] sm:$0xff]  ;;  %v327_v18 = vld [vmem:[%s1680_s2 + $0x28] sm:$0xff]  ;;  %v498_v25 = vld [vmem:[%s1682_s4] sm:$0xff] }
  0x15   :  { %340 = vperm.xlu1 %1080, %v322_v10   ;;  %v329_v19 = vld [vmem:[%s1680_s2 + $0x38] sm:$0xff]  ;;  %v331_v21 = vld [vmem:[%s1680_s2 + $0x48] sm:$0xff]  ;;  %v500_v26 = vld [vmem:[%s1682_s4 + $0x10] sm:$0xff]  ;;  %p1104_p2 = pnand %p1102_p1, %p1099_p0 }
  0x16   :  { %225 = vperm.xlu0 %1078, %v1188_v11   ;;  %v333_v22 = vld [vmem:[%s1680_s2 + $0x58] sm:$0xff]  ;;  %v38_v23 = vld [vmem:[%s1679_s1 + $0x48] sm:$0xff]  ;;  %v328_v27 = vld [vmem:[%s1680_s2 + $0x30] sm:$0xff] }
  0x17   :  { %v335_v24 = vld [vmem:[%s1680_s2 + $0x68] sm:$0xff]  ;;  %v787_v28 = vld [vmem:[%s1683_s5] sm:$0xff]  ;;  %v40_v30 = vld [vmem:[%s1679_s1 + $0x58] sm:$0xff] }
  0x18   :  { %v502_v29 = vld [vmem:[%s1682_s4 + $0x20] sm:$0xff]  ;;  %v503_v31 = vld [vmem:[%s1682_s4 + $0x28] sm:$0xff]  ;;  %v504_v32 = vld [vmem:[%s1682_s4 + $0x30] sm:$0xff] }
  0x19   :  { %67 = vperm.xlu1 %1080, %v33_v3   ;;  %v330_v33 = vld [vmem:[%s1680_s2 + $0x40] sm:$0xff]  ;;  %v505_v34 = vld [vmem:[%s1682_s4 + $0x38] sm:$0xff]  ;;  %v42_v36 = vld [vmem:[%s1679_s1 + $0x68] sm:$0xff] }
  0x1a   :  { %233 = vperm.xlu0 %1078, %v1195_v12   ;;  %v506_v35 = vld [vmem:[%s1682_s4 + $0x40] sm:$0xff]  ;;  %v507_v37 = vld [vmem:[%s1682_s4 + $0x48] sm:$0xff]  ;;  %v508_v38 = vld [vmem:[%s1682_s4 + $0x50] sm:$0xff] }
  0x1b   :  { %v509_v39 = vld [vmem:[%s1682_s4 + $0x58] sm:$0xff]  ;;  %v332_v40 = vld [vmem:[%s1680_s2 + $0x50] sm:$0xff]  ;;  %v510_v41 = vld [vmem:[%s1682_s4 + $0x60] sm:$0xff] }
  0x1c   :  { %v511_v42 = vld [vmem:[%s1682_s4 + $0x68] sm:$0xff]  ;;  %v44_v43 = vld [vmem:[%s1679_s1 + $0x78] sm:$0xff]  ;;  %v512_v44 = vld [vmem:[%s1682_s4 + $0x70] sm:$0xff] }
  0x1d   :  { %72 = vperm.xlu1 %1080, %v34_v13   ;;  %v513_v45 = vld [vmem:[%s1682_s4 + $0x78] sm:$0xff]  ;;  %v334_v46 = vld [vmem:[%s1680_s2 + $0x60] sm:$0xff]  ;;  %v801_v47 = vld [vmem:[%s1683_s5 + $0x70] sm:$0xff] }
  0x1e   :  { %1091 = vset.pattern.permute.xlu0 %v1111_v7  ;;  %v336_v50 = vld [vmem:[%s1680_s2 + $0x70] sm:$0xff]  ;;  %v337_v53 = vld [vmem:[%s1680_s2 + $0x78] sm:$0xff]  ;;  %v499_v56 = vld [vmem:[%s1682_s4 + $0x8] sm:$0xff] }
  0x1f   :  { %47 = vperm.xlu0 %1091, %v29_v1   ;;  %v501_v58 = vld [vmem:[%s1682_s4 + $0x18] sm:$0xff]  ;;  %v788_v63 = vld [vmem:[%s1683_s5 + $0x8] sm:$0xff]  ;;  %v789_v3 = vld [vmem:[%s1683_s5 + $0x10] sm:$0xff] }
  0x21   :  { %1081 = vset.pattern.permute.xlu1 %v1110_v2 }
  0x22   :  { %197 = vperm.xlu1 %1081, %v34_v13  }
  0x23   :  { %52 = vperm.xlu0 %1091, %v30_v4  }
  0x26   :  { %1082 = vset.pattern.permute.xlu1 %v1111_v7 }
  0x27   :  { %57 = vperm.xlu0 %1091, %v31_v0   ;;  %350 = vperm.xlu1 %1082, %v324_v14   ;;  %v127_v0 = vshrl.u32 %v126_v60, 7 }
  0x29   :  { %v242_v4 = vsub.s32 1, %v127_v0  ;;  %v128_v6 = vsub.s32 0, %v127_v0 }
  0x2b   :  { %345 = vperm.xlu0 %1091, %v323_v15   ;;  %77 = vperm.xlu1 %1082, %v35_v5   ;;  %v246_v5 = vsub.s32 3, %v127_v0 }
  0x2f   :  { %355 = vperm.xlu0 %1091, %v325_v16   ;;  %82 = vperm.xlu1 %1082, %v36_v17  }
  0x33   :  { %365 = vperm.xlu0 %1091, %v327_v18   ;;  %1083 = vset.pattern.permute.xlu1 %v1110_v2  ;;  %v791_v18 = vld [vmem:[%s1683_s5 + $0x20] sm:$0xff] }
  0x34   :  { %205 = vperm.xlu1 %1083, %v36_v17  }
  0x37   :  { %375 = vperm.xlu0 %1091, %v329_v19  }
  0x38   :  { %1084 = vset.pattern.permute.xlu1 %v1111_v7 }
  0x39   :  { %360 = vperm.xlu1 %1084, %v326_v20  }
  0x3b   :  { %385 = vperm.xlu0 %1091, %v331_v21  }
  0x3d   :  { %87 = vperm.xlu1 %1084, %v37_v8  }
  0x3f   :  { %395 = vperm.xlu0 %1091, %v333_v22  }
  0x41   :  { %92 = vperm.xlu1 %1084, %v38_v23  }
  0x43   :  { %405 = vperm.xlu0 %1091, %v335_v24  }
  0x45   :  { %1085 = vset.pattern.permute.xlu1 %v1110_v2 }
  0x46   :  { %213 = vperm.xlu1 %1085, %v38_v23  }
  0x47   :  { %516 = vperm.xlu0 %1091, %v498_v25  }
  0x4a   :  { %1086 = vset.pattern.permute.xlu1 %v1111_v7 }
  0x4b   :  { %526 = vperm.xlu0 %1091, %v500_v26   ;;  %370 = vperm.xlu1 %1086, %v328_v27   ;;  %v792_v27 = vld [vmem:[%s1683_s5 + $0x28] sm:$0xff] }
  0x4f   :  { %805 = vperm.xlu0 %1091, %v787_v28   ;;  %97 = vperm.xlu1 %1086, %v39_v9   ;;  %v28_v9 = vld [vmem:[%s1678_s0] sm:$0xf] }
  0x50   :  { %v247_v13 = vrot.slane %v28_v9, %v246_v5  ;;  %v129_v14 = vrot.slane %v28_v9, %v128_v6 }
  0x52   :  { %v1369_v20 = vrot.slane %v247_v13, %v242_v4  ;;  %v1371_v21 = vrot.slane %v129_v14, %v128_v6 }
  0x53   :  { %536 = vperm.xlu0 %1091, %v502_v29   ;;  %102 = vperm.xlu1 %1086, %v40_v30  }
  0x57   :  { %541 = vperm.xlu0 %1091, %v503_v31   ;;  %1087 = vset.pattern.permute.xlu1 %v1110_v2 }
  0x58   :  { %221 = vperm.xlu1 %1087, %v40_v30  }
  0x5b   :  { %546 = vperm.xlu0 %1091, %v504_v32  }
  0x5c   :  { %1088 = vset.pattern.permute.xlu1 %v1111_v7 }
  0x5d   :  { %380 = vperm.xlu1 %1088, %v330_v33  }
  0x5f   :  { %551 = vperm.xlu0 %1091, %v505_v34  }
  0x61   :  { %107 = vperm.xlu1 %1088, %v1188_v11   ;;  %v790_v11 = vld [vmem:[%s1683_s5 + $0x18] sm:$0xff] }
  0x63   :  { %556 = vperm.xlu0 %1091, %v506_v35  }
  0x65   :  { %112 = vperm.xlu1 %1088, %v42_v36  }
  0x67   :  { %561 = vperm.xlu0 %1091, %v507_v37  }
  0x69   :  { %1089 = vset.pattern.permute.xlu1 %v1110_v2 }
  0x6a   :  { %229 = vperm.xlu1 %1089, %v42_v36  }
  0x6b   :  { %566 = vperm.xlu0 %1091, %v508_v38   ;;  %v793_v38 = vld [vmem:[%s1683_s5 + $0x30] sm:$0xff] }
  0x6e   :  { %1090 = vset.pattern.permute.xlu1 %v1111_v7 }
  0x6f   :  { %571 = vperm.xlu0 %1091, %v509_v39   ;;  %390 = vperm.xlu1 %1090, %v332_v40  }
  0x73   :  { %576 = vperm.xlu0 %1091, %v510_v41   ;;  %117 = vperm.xlu1 %1090, %v1195_v12   ;;  %v243_v12 = vrot.slane %v28_v9, %v242_v4 }
  0x75   :  { %v1367_v19 = vrot.slane %v243_v12, %v242_v4  ;;  %v795_v12 = vld [vmem:[%s1683_s5 + $0x40] sm:$0xff] }
  0x77   :  { %581 = vperm.xlu0 %1091, %v511_v42   ;;  %122 = vperm.xlu1 %1090, %v44_v43  }
  0x7b   :  { %586 = vperm.xlu0 %1091, %v512_v44   ;;  %1092 = vset.pattern.permute.xlu1 %v1110_v2 }
  0x7c   :  { %237 = vperm.xlu1 %1092, %v44_v43  }
  0x7f   :  { %591 = vperm.xlu0 %1091, %v513_v45  }
  0x80   :  { %1093 = vset.pattern.permute.xlu1 %v1111_v7  ;;  %v132_v7 = vsub.s32 2, %v127_v0 }
  0x81   :  { %400 = vperm.xlu1 %1093, %v334_v46   ;;  %v178_v48 = vpop.permute.xlu1 %177  ;;  %v186_v49 = vpop.permute.xlu0 %185 }
  0x82   :  { %v133_v15 = vrot.slane %v28_v9, %v132_v7  ;;  %v258_v28 = vmul.f32 %v1367_v19, %v178_v48  ;;  %v259_v29 = vmul.f32 %v1369_v20, %v178_v48  ;;  %v263_v30 = vmul.f32 %v1369_v20, %v186_v49 }
  0x83   :  { %875 = vperm.xlu0 %1091, %v801_v47   ;;  %v262_v33 = vmul.f32 %v1367_v19, %v186_v49 }
  0x84   :  { %v1373_v22 = vrot.slane %v133_v15, %v128_v6 }
  0x85   :  { %410 = vperm.xlu1 %1093, %v336_v50   ;;  %v1321_v51 = vpop.permute.xlu1 %181  ;;  %v1323_v52 = vpop.permute.xlu0 %193 }
  0x86   :  { %v260_v39 = vmul.f32 %v1367_v19, %v1321_v51  ;;  %v261_v40 = vmul.f32 %v1369_v20, %v1321_v51  ;;  %v794_v51 = vld [vmem:[%s1683_s5 + $0x38] sm:$0xff]  ;;  %v266_v15 = vmul.f32 %v1367_v19, %v1323_v52 }
  0x89   :  { %415 = vperm.xlu1 %1093, %v337_v53   ;;  %v1328_v54 = vpop.permute.xlu0 %201 }
  0x8a   :  { %v1330_v55 = vpop.permute.xlu1 %62 }
  0x8b   :  { %v150_v48 = vmul.f32 %v1371_v21, %v1330_v55 }
  0x8d   :  { %521 = vperm.xlu1 %1093, %v499_v56   ;;  %v1335_v57 = vpop.permute.xlu0 %209 }
  0x8f   :  { %v190_v59 = vpop.permute.xlu1 %189 }
  0x90   :  { %v264_v43 = vmul.f32 %v1367_v19, %v190_v59  ;;  %v265_v44 = vmul.f32 %v1369_v20, %v190_v59  ;;  %v151_v59 = vmul.f32 %v1373_v22, %v1330_v55 }
  0x91   :  { %531 = vperm.xlu1 %1093, %v501_v58   ;;  %v1340_v61 = vpop.permute.xlu0 %217 }
  0x92   :  { %v296_v0 = vadd.f32 %v264_v43, %v150_v48  ;;  %v297_v6 = vadd.f32 %v265_v44, %v151_v59  ;;  %v799_v59 = vld [vmem:[%s1683_s5 + $0x60] sm:$0xff] }
  0x94   :  { %v341_v1 = vpop.permute.xlu1 %340 }
  0x95   :  { %810 = vperm.xlu1 %1093, %v788_v63   ;;  %v1347_v2 = vpop.permute.xlu0 %225 }
  0x98   :  { %v1352_v8 = vpop.permute.xlu1 %67 }
  0x99   :  { %815 = vperm.xlu1 %1093, %v789_v3   ;;  %v1357_v10 = vpop.permute.xlu0 %233 }
  0x9c   :  { %v1362_v16 = vpop.permute.xlu1 %72 }
  0x9d   :  { %820 = vperm.xlu1 %1093, %v790_v11  }
  0x9e   :  { %v48_v17 = vpop.permute.xlu0 %47 }
  0x9f   :  { %v144_v24 = vmul.f32 %v1371_v21, %v48_v17  ;;  %v145_v25 = vmul.f32 %v1373_v22, %v48_v17 }
  0xa1   :  { %825 = vperm.xlu1 %1093, %v791_v18   ;;  %v198_v23 = vpop.permute.xlu1 %197  ;;  %v290_v34 = vadd.f32 %v258_v28, %v144_v24  ;;  %v291_v35 = vadd.f32 %v259_v29, %v145_v25  ;;  %v267_v29 = vmul.f32 %v1369_v20, %v1323_v52 }
  0xa2   :  { %v53_v26 = vpop.permute.xlu0 %52  ;;  %v268_v17 = vmul.f32 %v1367_v19, %v198_v23  ;;  %v269_v25 = vmul.f32 %v1369_v20, %v198_v23  ;;  %v796_v23 = vld [vmem:[%s1683_s5 + $0x48] sm:$0xff] }
  0xa3   :  { %v146_v31 = vmul.f32 %v1371_v21, %v53_v26  ;;  %v147_v32 = vmul.f32 %v1373_v22, %v53_v26  ;;  %v419_v56 = vadd.f32 %v341_v1, %v291_v35  ;;  %v418_v58 = vadd.f32 %v341_v1, %v290_v34 }
  0xa4   :  { %v155_v34 = vmul.f32 %v1373_v22, %v1362_v16 }
  0xa5   :  { %830 = vperm.xlu1 %1093, %v792_v27   ;;  %v292_v46 = vadd.f32 %v260_v39, %v146_v31  ;;  %v293_v47 = vadd.f32 %v261_v40, %v147_v32  ;;  %v451_v1 = vmax.f32 %v419_v56, 0.0  ;;  %v450_v13 = vmax.f32 %v418_v58, 0.0  ;;  %v797_v40 = vld [vmem:[%s1683_s5 + $0x50] sm:$0xff] }
  0xa6   :  { %v58_v36 = vpop.permute.xlu0 %57  ;;  %v351_v37 = vpop.permute.xlu1 %350  ;;  %v153_v31 = vmul.f32 %v1373_v22, %v1352_v8 }
  0xa7   :  { %v148_v41 = vmul.f32 %v1371_v21, %v58_v36  ;;  %v149_v42 = vmul.f32 %v1373_v22, %v58_v36 }
  0xa9   :  { %v295_v45 = vadd.f32 %v263_v30, %v149_v42  ;;  %835 = vperm.xlu1 %1093, %v793_v38   ;;  %v294_v49 = vadd.f32 %v262_v33, %v148_v41  ;;  %v152_v30 = vmul.f32 %v1371_v21, %v1352_v8  ;;  %v154_v33 = vmul.f32 %v1371_v21, %v1362_v16 }
  0xaa   :  { %v346_v50 = vpop.permute.xlu0 %345  ;;  %v1399_v53 = vpop.permute.xlu1 %77  ;;  %v301_v38 = vadd.f32 %v269_v25, %v155_v34  ;;  %v299_v16 = vadd.f32 %v267_v29, %v153_v31 }
  0xab   :  { %v420_v60 = vadd.f32 %v346_v50, %v292_v46  ;;  %v421_v63 = vadd.f32 %v346_v50, %v293_v47  ;;  %v423_v3 = vadd.f32 %v351_v37, %v295_v45  ;;  %v422_v7 = vadd.f32 %v351_v37, %v294_v49  ;;  %v798_v46 = vld [vmem:[%s1683_s5 + $0x58] sm:$0xff] }
  0xac   :  { %v300_v8 = vadd.f32 %v268_v17, %v154_v33  ;;  %v298_v39 = vadd.f32 %v266_v15, %v152_v30 }
  0xad   :  { %v452_v4 = vmax.f32 %v420_v60, 0.0  ;;  %v453_v5 = vmax.f32 %v421_v63, 0.0  ;;  %840 = vperm.xlu1 %1093, %v794_v51   ;;  %v455_v26 = vmax.f32 %v423_v3, 0.0  ;;  %v454_v32 = vmax.f32 %v422_v7, 0.0  ;;  %v800_v3 = vld [vmem:[%s1683_s5 + $0x68] sm:$0xff] }
  0xae   :  { %v356_v9 = vpop.permute.xlu0 %355  ;;  %v1406_v11 = vpop.permute.xlu1 %82  ;;  %v271_v7 = vmul.f32 %v1369_v20, %v1328_v54 }
  0xaf   :  { %v424_v14 = vadd.f32 %v356_v9, %v296_v0  ;;  %v425_v55 = vadd.f32 %v356_v9, %v297_v6  ;;  %v1016_v18 = vpack.c.bf16 %v453_v5, %v451_v1  ;;  %v1018_v24 = vpack.c.bf16 %v452_v4, %v450_v13 }
  0xb0   :  { %v158_v4 = vmul.f32 %v1371_v21, %v1406_v11  ;;  %v159_v5 = vmul.f32 %v1373_v22, %v1406_v11  ;;  %v270_v6 = vmul.f32 %v1367_v19, %v1328_v54  ;;  %v156_v9 = vmul.f32 %v1371_v21, %v1399_v53  ;;  %v802_v11 = vld [vmem:[%s1683_s5 + $0x78] sm:$0xff] }
  0xb1   :  { %v456_v27 = vmax.f32 %v424_v14, 0.0  ;;  %v457_v28 = vmax.f32 %v425_v55, 0.0  ;;  %845 = vperm.xlu1 %1093, %v795_v12   ;;  %1017 = vmatprep.subr.bf16.mxu0 %v1016_v18  ;;  %v157_v12 = vmul.f32 %v1373_v22, %v1399_v53 }
  0xb2   :  { %1048 = vmatprep.subr.bf16.mxu1 %v1016_v18  ;;  %1019 = vmatpush1.bf16.msra.mxu0 %v1018_v24  ;;  %v366_v36 = vpop.permute.xlu0 %365  ;;  %v302_v18 = vadd.f32 %v270_v6, %v156_v9 }
  0xb3   :  { %1056 = vmatpush1.bf16.msra.mxu1 %v1018_v24  ;;  %v206_v52 = vpop.permute.xlu1 %205  ;;  %v1020_v35 = vpack.c.bf16 %v457_v28, %v455_v26  ;;  %v1022_v37 = vpack.c.bf16 %v456_v27, %v454_v32  ;;  %v428_v41 = vadd.f32 %v366_v36, %v300_v8  ;;  %v429_v42 = vadd.f32 %v366_v36, %v301_v38 }
  0xb4   :  { %v272_v63 = vmul.f32 %v1367_v19, %v206_v52  ;;  %v273_v0 = vmul.f32 %v1369_v20, %v206_v52  ;;  %v303_v54 = vadd.f32 %v271_v7, %v157_v12  ;;  %v274_v36 = vmul.f32 %v1367_v19, %v1335_v57 }
  0xb5   :  { %850 = vperm.xlu1 %1093, %v796_v23   ;;  %1021 = vmatprep.subr.bf16.mxu0 %v1020_v35  ;;  %v460_v47 = vmax.f32 %v428_v41, 0.0  ;;  %v461_v48 = vmax.f32 %v429_v42, 0.0 }
  0xb6   :  { %1049 = vmatprep.subr.bf16.mxu1 %v1020_v35  ;;  %1023 = vmatpush1.bf16.msra.mxu0 %v1022_v37  ;;  %v304_v1 = vadd.f32 %v272_v63, %v158_v4  ;;  %v305_v13 = vadd.f32 %v273_v0, %v159_v5  ;;  %v376_v55 = vpop.permute.xlu0 %375 }
  0xb7   :  { %1057 = vmatpush1.bf16.msra.mxu1 %v1022_v37  ;;  %v275_v37 = vmul.f32 %v1369_v20, %v1335_v57 }
  0xb8   :  { %v361_v43 = vpop.permute.xlu1 %360  ;;  %v432_v15 = vadd.f32 %v376_v55, %v304_v1  ;;  %v433_v17 = vadd.f32 %v376_v55, %v305_v13  ;;  %v278_v1 = vmul.f32 %v1367_v19, %v1340_v61  ;;  %v279_v13 = vmul.f32 %v1369_v20, %v1340_v61 }
  0xb9   :  { %v426_v44 = vadd.f32 %v361_v43, %v298_v39  ;;  %v427_v45 = vadd.f32 %v361_v43, %v299_v16  ;;  %855 = vperm.xlu1 %1093, %v797_v40  }
  0xba   :  { %v464_v27 = vmax.f32 %v432_v15, 0.0  ;;  %v465_v28 = vmax.f32 %v433_v17, 0.0  ;;  %v386_v42 = vpop.permute.xlu0 %385 }
  0xbb   :  { %v458_v49 = vmax.f32 %v426_v44, 0.0  ;;  %v459_v50 = vmax.f32 %v427_v45, 0.0 }
  0xbc   :  { %v88_v51 = vpop.permute.xlu1 %87 }
  0xbd   :  { %860 = vperm.xlu1 %1093, %v798_v46   ;;  %v1024_v56 = vpack.c.bf16 %v461_v48, %v459_v50  ;;  %v1026_v58 = vpack.c.bf16 %v460_v47, %v458_v49  ;;  %v160_v8 = vmul.f32 %v1371_v21, %v88_v51  ;;  %v161_v38 = vmul.f32 %v1373_v22, %v88_v51 }
  0xbf   :  { %1025 = vmatprep.subr.bf16.mxu0 %v1024_v56  ;;  %1050 = vmatprep.subr.bf16.mxu1 %v1024_v56  ;;  %v306_v44 = vadd.f32 %v274_v36, %v160_v8  ;;  %v307_v45 = vadd.f32 %v275_v37, %v161_v38  ;;  %v282_v8 = vmul.f32 %v1367_v19, %v1347_v2 }
  0xc0   :  { %v93_v60 = vpop.permute.xlu1 %92  ;;  %1027 = vmatpush1.bf16.msra.mxu0 %v1026_v58  ;;  %1058 = vmatpush1.bf16.msra.mxu1 %v1026_v58  ;;  %v283_v38 = vmul.f32 %v1369_v20, %v1347_v2 }
  0xc1   :  { %865 = vperm.xlu1 %1093, %v799_v59   ;;  %v162_v52 = vmul.f32 %v1371_v21, %v93_v60  ;;  %v163_v35 = vmul.f32 %v1373_v22, %v93_v60 }
  0xc5   :  { %870 = vperm.xlu1 %1093, %v800_v3   ;;  %v214_v14 = vpop.permute.xlu1 %213 }
  0xc6   :  { %v276_v33 = vmul.f32 %v1367_v19, %v214_v14  ;;  %v277_v34 = vmul.f32 %v1369_v20, %v214_v14  ;;  %v396_v14 = vpop.permute.xlu0 %395 }
  0xc8   :  { %v308_v39 = vadd.f32 %v276_v33, %v162_v52  ;;  %v309_v40 = vadd.f32 %v277_v34, %v163_v35 }
  0xc9   :  { %880 = vperm.xlu1 %1093, %v802_v11  }
  0xca   :  { %v371_v24 = vpop.permute.xlu1 %370  ;;  %v436_v16 = vadd.f32 %v386_v42, %v308_v39  ;;  %v437_v43 = vadd.f32 %v386_v42, %v309_v40  ;;  %v406_v39 = vpop.permute.xlu0 %405 }
  0xcb   :  { %v430_v25 = vadd.f32 %v371_v24, %v302_v18  ;;  %v431_v26 = vadd.f32 %v371_v24, %v303_v54 }
  0xcc   :  { %v469_v56 = vmax.f32 %v437_v43, 0.0  ;;  %v468_v58 = vmax.f32 %v436_v16, 0.0 }
  0xcd   :  { %v462_v53 = vmax.f32 %v430_v25, 0.0  ;;  %v463_v29 = vmax.f32 %v431_v26, 0.0 }
  0xce   :  { %v98_v30 = vpop.permute.xlu1 %97 }
  0xcf   :  { %v1028_v31 = vpack.c.bf16 %v465_v28, %v463_v29  ;;  %v1030_v32 = vpack.c.bf16 %v464_v27, %v462_v53  ;;  %v164_v5 = vmul.f32 %v1371_v21, %v98_v30  ;;  %v165_v6 = vmul.f32 %v1373_v22, %v98_v30 }
  0xd1   :  { %1029 = vmatprep.subr.bf16.mxu0 %v1028_v31  ;;  %1051 = vmatprep.subr.bf16.mxu1 %v1028_v31  ;;  %v310_v15 = vadd.f32 %v278_v1, %v164_v5  ;;  %v311_v17 = vadd.f32 %v279_v13, %v165_v6 }
  0xd2   :  { %v103_v23 = vpop.permute.xlu1 %102  ;;  %1031 = vmatpush1.bf16.msra.mxu0 %v1030_v32  ;;  %1059 = vmatpush1.bf16.msra.mxu1 %v1030_v32 }
  0xd3   :  { %v166_v3 = vmul.f32 %v1371_v21, %v103_v23  ;;  %v167_v4 = vmul.f32 %v1373_v22, %v103_v23 }
  0xd7   :  { %v222_v41 = vpop.permute.xlu1 %221 }
  0xd8   :  { %v280_v63 = vmul.f32 %v1367_v19, %v222_v41  ;;  %v281_v0 = vmul.f32 %v1369_v20, %v222_v41 }
  0xda   :  { %v312_v7 = vadd.f32 %v280_v63, %v166_v3  ;;  %v313_v9 = vadd.f32 %v281_v0, %v167_v4 }
  0xdc   :  { %v381_v46 = vpop.permute.xlu1 %380  ;;  %v440_v55 = vadd.f32 %v396_v14, %v312_v7  ;;  %v441_v11 = vadd.f32 %v396_v14, %v313_v9 }
  0xdd   :  { %v434_v47 = vadd.f32 %v381_v46, %v306_v44  ;;  %v435_v48 = vadd.f32 %v381_v46, %v307_v45 }
  0xde   :  { %v473_v27 = vmax.f32 %v441_v11, 0.0  ;;  %v472_v28 = vmax.f32 %v440_v55, 0.0  ;;  %v482_v11 = vld [vmem:[%s1681_s3] sm:$0xff] }
  0xdf   :  { %v466_v49 = vmax.f32 %v434_v47, 0.0  ;;  %v467_v50 = vmax.f32 %v435_v48, 0.0  ;;  %v286_v48 = vmul.f32 %v1367_v19, %v1357_v10 }
  0xe0   :  { %v108_v57 = vpop.permute.xlu1 %107 }
  0xe1   :  { %v1032_v59 = vpack.c.bf16 %v469_v56, %v467_v50  ;;  %v1034_v60 = vpack.c.bf16 %v468_v58, %v466_v49  ;;  %v168_v52 = vmul.f32 %v1371_v21, %v108_v57  ;;  %v169_v35 = vmul.f32 %v1373_v22, %v108_v57 }
  0xe2   :  { %v287_v49 = vmul.f32 %v1369_v20, %v1357_v10 }
  0xe3   :  { %1033 = vmatprep.subr.bf16.mxu0 %v1032_v59  ;;  %1052 = vmatprep.subr.bf16.mxu1 %v1032_v59  ;;  %v314_v42 = vadd.f32 %v282_v8, %v168_v52  ;;  %v315_v16 = vadd.f32 %v283_v38, %v169_v35 }
  0xe4   :  { %v113_v51 = vpop.permute.xlu1 %112  ;;  %1035 = vmatpush1.bf16.msra.mxu0 %v1034_v60  ;;  %1060 = vmatpush1.bf16.msra.mxu1 %v1034_v60 }
  0xe5   :  { %v171_v23 = vmul.f32 %v1373_v22, %v113_v51  ;;  %v170_v33 = vmul.f32 %v1371_v21, %v113_v51 }
  0xe9   :  { %v230_v12 = vpop.permute.xlu1 %229 }
  0xea   :  { %v285_v31 = vmul.f32 %v1369_v20, %v230_v12  ;;  %v284_v32 = vmul.f32 %v1367_v19, %v230_v12 }
  0xec   :  { %v317_v34 = vadd.f32 %v285_v31, %v171_v23  ;;  %v316_v36 = vadd.f32 %v284_v32, %v170_v33  ;;  %v496_v31 = vld [vmem:[%s1681_s3 + $0x70] sm:$0xff]  ;;  %v497_v32 = vld [vmem:[%s1681_s3 + $0x78] sm:$0xff]  ;;  %v517_v23 = vpop.permute.xlu0 %516 }
  0xee   :  { %v391_v18 = vpop.permute.xlu1 %390  ;;  %v445_v40 = vadd.f32 %v406_v39, %v317_v34  ;;  %v444_v41 = vadd.f32 %v406_v39, %v316_v36 }
  0xef   :  { %v438_v54 = vadd.f32 %v391_v18, %v310_v15  ;;  %v439_v24 = vadd.f32 %v391_v18, %v311_v17  ;;  %v490_v15 = vld [vmem:[%s1681_s3 + $0x40] sm:$0xff]  ;;  %v483_v17 = vld [vmem:[%s1681_s3 + $0x8] sm:$0xff] }
  0xf0   :  { %v477_v50 = vmax.f32 %v445_v40, 0.0  ;;  %v476_v59 = vmax.f32 %v444_v41, 0.0  ;;  %v491_v18 = vld [vmem:[%s1681_s3 + $0x48] sm:$0xff]  ;;  %v527_v34 = vpop.permute.xlu0 %526 }
  0xf1   :  { %v470_v25 = vmax.f32 %v438_v54, 0.0  ;;  %v471_v26 = vmax.f32 %v439_v24, 0.0  ;;  %v484_v54 = vld [vmem:[%s1681_s3 + $0x10] sm:$0xff] }
  0xf2   :  { %v118_v53 = vpop.permute.xlu1 %117  ;;  %v492_v24 = vld [vmem:[%s1681_s3 + $0x50] sm:$0xff] }
  0xf3   :  { %v1036_v29 = vpack.c.bf16 %v473_v27, %v471_v26  ;;  %v1038_v30 = vpack.c.bf16 %v472_v28, %v470_v25  ;;  %v172_v43 = vmul.f32 %v1371_v21, %v118_v53  ;;  %v173_v45 = vmul.f32 %v1373_v22, %v118_v53  ;;  %v485_v25 = vld [vmem:[%s1681_s3 + $0x18] sm:$0xff]  ;;  %v486_v27 = vld [vmem:[%s1681_s3 + $0x20] sm:$0xff]  ;;  %v487_v53 = vld [vmem:[%s1681_s3 + $0x28] sm:$0xff] }
  0xf4   :  { %v493_v26 = vld [vmem:[%s1681_s3 + $0x58] sm:$0xff]  ;;  %v494_v28 = vld [vmem:[%s1681_s3 + $0x60] sm:$0xff]  ;;  %v806_v35 = vpop.permute.xlu0 %805 }
  0xf5   :  { %1037 = vmatprep.subr.bf16.mxu0 %v1036_v29  ;;  %1053 = vmatprep.subr.bf16.mxu1 %v1036_v29  ;;  %v318_v63 = vadd.f32 %v286_v48, %v172_v43  ;;  %v319_v3 = vadd.f32 %v287_v49, %v173_v45  ;;  %v495_v29 = vld [vmem:[%s1681_s3 + $0x68] sm:$0xff] }
  0xf6   :  { %v123_v61 = vpop.permute.xlu1 %122  ;;  %1039 = vmatpush1.bf16.msra.mxu0 %v1038_v30  ;;  %1061 = vmatpush1.bf16.msra.mxu1 %v1038_v30  ;;  %v488_v30 = vld [vmem:[%s1681_s3 + $0x30] sm:$0xff] }
  0xf7   :  { %v174_v60 = vmul.f32 %v1371_v21, %v123_v61  ;;  %v175_v0 = vmul.f32 %v1373_v22, %v123_v61  ;;  %v489_v61 = vld [vmem:[%s1681_s3 + $0x38] sm:$0xff] }
  0xfb   :  { %v238_v37 = vpop.permute.xlu1 %237 }
  0xfc   :  { %v288_v2 = vmul.f32 %v1367_v19, %v238_v37  ;;  %v289_v56 = vmul.f32 %v1369_v20, %v238_v37  ;;  %v1559_v37 = vpop.permute.xlu0 %536 }
  0xfe   :  { %v320_v6 = vadd.f32 %v288_v2, %v174_v60  ;;  %v321_v19 = vadd.f32 %v289_v56, %v175_v0 }
 0x100   :  { %v401_v44 = vpop.permute.xlu1 %400 }
 0x101   :  { %v442_v46 = vadd.f32 %v401_v44, %v314_v42  ;;  %v443_v47 = vadd.f32 %v401_v44, %v315_v16 }
 0x103   :  { %v474_v58 = vmax.f32 %v442_v46, 0.0  ;;  %v475_v57 = vmax.f32 %v443_v47, 0.0 }
 0x104   :  { %v411_v51 = vpop.permute.xlu1 %410 }
 0x105   :  { %v1040_v4 = vpack.c.bf16 %v477_v50, %v475_v57  ;;  %v1042_v5 = vpack.c.bf16 %v476_v59, %v474_v58  ;;  %v446_v7 = vadd.f32 %v411_v51, %v318_v63  ;;  %v447_v10 = vadd.f32 %v411_v51, %v319_v3 }
 0x107   :  { %1041 = vmatprep.subr.bf16.mxu0 %v1040_v4  ;;  %1054 = vmatprep.subr.bf16.mxu1 %v1040_v4  ;;  %v478_v1 = vmax.f32 %v446_v7, 0.0  ;;  %v479_v21 = vmax.f32 %v447_v10, 0.0 }
 0x108   :  { %v416_v9 = vpop.permute.xlu1 %415  ;;  %1043 = vmatpush1.bf16.msra.mxu0 %v1042_v5  ;;  %1062 = vmatpush1.bf16.msra.mxu1 %v1042_v5 }
 0x109   :  { %v448_v20 = vadd.f32 %v416_v9, %v320_v6  ;;  %v449_v12 = vadd.f32 %v416_v9, %v321_v19 }
 0x10b   :  { %v480_v13 = vmax.f32 %v448_v20, 0.0  ;;  %v481_v14 = vmax.f32 %v449_v12, 0.0 }
 0x10c   :  { %v522_v33 = vpop.permute.xlu1 %521 }
 0x10d   :  { %v1044_v55 = vpack.c.bf16 %v481_v14, %v479_v21  ;;  %v1046_v22 = vpack.c.bf16 %v480_v13, %v478_v1 }
 0x10f   :  { %1045 = vmatprep.subr.bf16.mxu0 %v1044_v55  ;;  %1055 = vmatprep.subr.bf16.mxu1 %v1044_v55 }
 0x110   :  { %1047 = vmatpush1.bf16.msra.mxu0 %v1046_v22  ;;  %1063 = vmatpush1.bf16.msra.mxu1 %v1046_v22  ;;  %v532_v52 = vpop.permute.xlu1 %531 }
 0x113   :  { %659 = vmatmul.mubr.f32.vlgmr.msra.gmra.mrb[0].mxu0 %v482_v11  ;;  %707 = vmatmul.mubr.f32.vlgmr.msra.gmra.mrb[0].mxu1 %v490_v15 }
 0x114   :  { %664 = vmatprep.mubr.f32.mxu0 %v1112_v62  ;;  %712 = vmatprep.mubr.f32.mxu1 %v1112_v62  ;;  %v811_v36 = vpop.permute.xlu1 %810 }
 0x117   :  { %665 = vmatmul.mubr.f32.gmra.mrb[2].mxu0 %v483_v17  ;;  %713 = vmatmul.mubr.f32.gmra.mrb[2].mxu1 %v491_v18 }
 0x118   :  { %670 = vmatprep.mubr.f32.mxu0 %v1112_v62  ;;  %718 = vmatprep.mubr.f32.mxu1 %v1112_v62  ;;  %v816_v8 = vpop.permute.xlu1 %815 }
 0x11b   :  { %671 = vmatmul.mubr.f32.gmra.mrb[4].mxu0 %v484_v54  ;;  %719 = vmatmul.mubr.f32.gmra.mrb[4].mxu1 %v492_v24 }
 0x11c   :  { %676 = vmatprep.mubr.f32.mxu0 %v1112_v62  ;;  %724 = vmatprep.mubr.f32.mxu1 %v1112_v62  ;;  %v821_v38 = vpop.permute.xlu1 %820 }
 0x11f   :  { %677 = vmatmul.mubr.f32.gmra.mrb[6].mxu0 %v485_v25  ;;  %725 = vmatmul.mubr.f32.gmra.mrb[6].mxu1 %v493_v26 }
 0x120   :  { %682 = vmatprep.mubr.f32.mxu0 %v1112_v62  ;;  %730 = vmatprep.mubr.f32.mxu1 %v1112_v62  ;;  %v1565_v40 = vpop.permute.xlu1 %825 }
 0x123   :  { %683 = vmatmul.mubr.f32.gmra.mrb[8].mxu0 %v486_v27  ;;  %731 = vmatmul.mubr.f32.gmra.mrb[8].mxu1 %v494_v28 }
 0x124   :  { %688 = vmatprep.mubr.f32.mxu0 %v1112_v62  ;;  %736 = vmatprep.mubr.f32.mxu1 %v1112_v62  ;;  %v1569_v42 = vpop.permute.xlu1 %830 }
 0x127   :  { %689 = vmatmul.mubr.f32.gmra.mrb[10].mxu0 %v487_v53  ;;  %737 = vmatmul.mubr.f32.gmra.mrb[10].mxu1 %v495_v29 }
 0x128   :  { %694 = vmatprep.mubr.f32.mxu0 %v1112_v62  ;;  %742 = vmatprep.mubr.f32.mxu1 %v1112_v62  ;;  %v1573_v43 = vpop.permute.xlu1 %835 }
 0x12b   :  { %695 = vmatmul.mubr.f32.gmra.mrb[12].mxu0 %v488_v30  ;;  %743 = vmatmul.mubr.f32.gmra.mrb[12].mxu1 %v496_v31 }
 0x12c   :  { %700 = vmatprep.mubr.f32.mxu0 %v1112_v62  ;;  %748 = vmatprep.mubr.f32.mxu1 %v1112_v62  ;;  %v1561_v62 = vpop.permute.xlu0 %541  ;;  %v1577_v45 = vpop.permute.xlu1 %840 }
 0x12f   :  { %701 = vmatmul.mubr.f32.gmra.mrb[14].mxu0 %v489_v61  ;;  %749 = vmatmul.mubr.f32.gmra.mrb[14].mxu1 %v497_v32 }
 0x130   :  { %v1563_v39 = vpop.permute.xlu0 %546  ;;  %v1589_v4 = vpop.permute.xlu1 %845 }
 0x134   :  { %v1567_v41 = vpop.permute.xlu0 %551  ;;  %v1601_v29 = vpop.permute.xlu1 %850 }
 0x138   :  { %v1571_v16 = vpop.permute.xlu0 %556 }
 0x13c   :  { %v1575_v44 = vpop.permute.xlu0 %561 }
 0x140   :  { %v1583_v56 = vpop.permute.xlu0 %566 }
 0x144   :  { %v1595_v55 = vpop.permute.xlu0 %571 }
 0x1e6   :  { %v660_v46 = vpop.f32.mrb[0].mxu0  ;;  %v1579_v47 = vpop.f32.mrb[0].mxu1 }
 0x1e7   :  { %v661_v48 = vadd.f32 %v660_v46, %v517_v23  ;;  %v662_v49 = vpop.f32.mrb[1].mxu0  ;;  %v1581_v2 = vpop.f32.mrb[1].mxu1 }
 0x1e8   :  { %v663_v50 = vadd.f32 %v662_v49, %v517_v23 }
 0x1e9   :  { %v755_v59 = vmax.f32 %v661_v48, 0.0 }
 0x1ea   :  { %v666_v58 = vpop.f32.mrb[2].mxu0  ;;  %v1585_v57 = vpop.f32.mrb[2].mxu1  ;;  %v756_v0 = vmax.f32 %v663_v50, 0.0 }
 0x1eb   :  { %v667_v60 = vadd.f32 %v666_v58, %v522_v33  ;;  %v668_v51 = vpop.f32.mrb[3].mxu0  ;;  %v1587_v63 = vpop.f32.mrb[3].mxu1  ;;  %v883_v19 = vmul.f32 %v806_v35, %v755_v59 }
 0x1ec   :  { %v669_v3 = vadd.f32 %v668_v51, %v522_v33  ;;  %v884_v21 = vmul.f32 %v806_v35, %v756_v0 }
 0x1ed   :  { %v757_v5 = vmax.f32 %v667_v60, 0.0 }
 0x1ee   :  { %v758_v6 = vmax.f32 %v669_v3, 0.0  ;;  %v672_v7 = vpop.f32.mrb[4].mxu0  ;;  %v1591_v10 = vpop.f32.mrb[4].mxu1 }
 0x1ef   :  { %v885_v9 = vmul.f32 %v811_v36, %v757_v5  ;;  %v673_v20 = vadd.f32 %v672_v7, %v527_v34  ;;  %v674_v12 = vpop.f32.mrb[5].mxu0  ;;  %v1593_v1 = vpop.f32.mrb[5].mxu1 }
 0x1f0   :  { %v886_v13 = vmul.f32 %v811_v36, %v758_v6  ;;  %v675_v14 = vadd.f32 %v674_v12, %v527_v34  ;;  %v1619_v7 = vpop.permute.xlu1 %855 }
 0x1f1   :  { %v915_v22 = vadd.f32 %v885_v9, %v883_v19  ;;  %v759_v11 = vmax.f32 %v673_v20, 0.0 }
 0x1f2   :  { %v936_v15 = vadd.f32 %v886_v13, %v884_v21  ;;  %v760_v17 = vmax.f32 %v675_v14, 0.0  ;;  %v678_v18 = vpop.f32.mrb[6].mxu0  ;;  %v1597_v54 = vpop.f32.mrb[6].mxu1 }
 0x1f3   :  { %v887_v24 = vmul.f32 %v816_v8, %v759_v11  ;;  %v679_v25 = vadd.f32 %v678_v18, %v532_v52  ;;  %v680_v26 = vpop.f32.mrb[7].mxu0  ;;  %v1599_v27 = vpop.f32.mrb[7].mxu1 }
 0x1f4   :  { %v888_v28 = vmul.f32 %v816_v8, %v760_v17  ;;  %v681_v53 = vadd.f32 %v680_v26, %v532_v52  ;;  %v1609_v8 = vpop.permute.xlu0 %576  ;;  %v711_v26 = vadd.f32 %v1581_v2, %v1571_v16 }
 0x1f5   :  { %v916_v30 = vadd.f32 %v915_v22, %v887_v24  ;;  %v761_v31 = vmax.f32 %v679_v25, 0.0 }
 0x1f6   :  { %v937_v61 = vadd.f32 %v936_v15, %v888_v28  ;;  %v762_v32 = vmax.f32 %v681_v53, 0.0  ;;  %v684_v23 = vpop.f32.mrb[8].mxu0  ;;  %v1603_v33 = vpop.f32.mrb[8].mxu1 }
 0x1f7   :  { %v889_v34 = vmul.f32 %v821_v38, %v761_v31  ;;  %v685_v35 = vadd.f32 %v684_v23, %v1559_v37  ;;  %v686_v36 = vpop.f32.mrb[9].mxu0  ;;  %v1606_v46 = vpop.f32.mrb[9].mxu1 }
 0x1f8   :  { %v890_v48 = vmul.f32 %v821_v38, %v762_v32  ;;  %v687_v49 = vadd.f32 %v686_v36, %v1559_v37  ;;  %v582_v18 = vpop.permute.xlu0 %581  ;;  %v721_v36 = vadd.f32 %v1591_v10, %v1583_v56 }
 0x1f9   :  { %v917_v52 = vadd.f32 %v916_v30, %v889_v34  ;;  %v763_v50 = vmax.f32 %v685_v35, 0.0  ;;  %v861_v34 = vpop.permute.xlu1 %860 }
 0x1fa   :  { %v938_v58 = vadd.f32 %v937_v61, %v890_v48  ;;  %v764_v59 = vmax.f32 %v687_v49, 0.0  ;;  %v690_v60 = vpop.f32.mrb[10].mxu0  ;;  %v1611_v51 = vpop.f32.mrb[10].mxu1  ;;  %v715_v61 = vadd.f32 %v1585_v57, %v1575_v44  ;;  %v772_v49 = vmax.f32 %v711_v26, 0.0 }
 0x1fb   :  { %v891_v0 = vmul.f32 %v1565_v40, %v763_v50  ;;  %v691_v3 = vadd.f32 %v690_v60, %v1561_v62  ;;  %v692_v5 = vpop.f32.mrb[11].mxu0  ;;  %v1615_v6 = vpop.f32.mrb[11].mxu1  ;;  %v729_v60 = vadd.f32 %v1599_v27, %v1595_v55 }
 0x1fc   :  { %v892_v38 = vmul.f32 %v1565_v40, %v764_v59  ;;  %v693_v37 = vadd.f32 %v692_v5, %v1561_v62  ;;  %v709_v62 = vadd.f32 %v1579_v47, %v1571_v16  ;;  %v717_v47 = vadd.f32 %v1587_v63, %v1575_v44  ;;  %v587_v63 = vpop.permute.xlu0 %586 }
 0x1fd   :  { %v918_v19 = vadd.f32 %v917_v52, %v891_v0  ;;  %v765_v9 = vmax.f32 %v691_v3, 0.0  ;;  %v723_v52 = vadd.f32 %v1593_v1, %v1583_v56  ;;  %v773_v59 = vmax.f32 %v715_v61, 0.0  ;;  %v866_v5 = vpop.permute.xlu1 %865 }
 0x1fe   :  { %v939_v20 = vadd.f32 %v938_v58, %v892_v38  ;;  %v766_v12 = vmax.f32 %v693_v37, 0.0  ;;  %v696_v21 = vpop.f32.mrb[12].mxu0  ;;  %v744_v13 = vpop.f32.mrb[12].mxu1  ;;  %v771_v2 = vmax.f32 %v709_v62, 0.0  ;;  %v727_v44 = vadd.f32 %v1597_v54, %v1595_v55 }
 0x1ff   :  { %v893_v14 = vmul.f32 %v1569_v42, %v765_v9  ;;  %v697_v22 = vadd.f32 %v696_v21, %v1563_v39  ;;  %v698_v11 = vpop.f32.mrb[13].mxu0  ;;  %v746_v15 = vpop.f32.mrb[13].mxu1  ;;  %v775_v3 = vmax.f32 %v721_v36, 0.0  ;;  %v733_v56 = vadd.f32 %v1603_v33, %v1609_v8 }
 0x200   :  { %v894_v17 = vmul.f32 %v1569_v42, %v766_v12  ;;  %v699_v40 = vadd.f32 %v698_v11, %v1563_v39  ;;  %v899_v0 = vmul.f32 %v1589_v4, %v771_v2  ;;  %v900_v38 = vmul.f32 %v1589_v4, %v772_v49 }
 0x201   :  { %v919_v24 = vadd.f32 %v918_v19, %v893_v14  ;;  %v767_v25 = vmax.f32 %v697_v22, 0.0  ;;  %v776_v54 = vmax.f32 %v723_v52, 0.0  ;;  %v735_v37 = vadd.f32 %v1606_v46, %v1609_v8 }
 0x202   :  { %v940_v28 = vadd.f32 %v939_v20, %v894_v17  ;;  %v768_v53 = vmax.f32 %v699_v40, 0.0  ;;  %v702_v30 = vpop.f32.mrb[14].mxu0  ;;  %v750_v31 = vpop.f32.mrb[14].mxu1  ;;  %v901_v9 = vmul.f32 %v1601_v29, %v773_v59  ;;  %v777_v55 = vmax.f32 %v727_v44, 0.0 }
 0x203   :  { %v895_v42 = vmul.f32 %v1573_v43, %v767_v25  ;;  %v703_v39 = vadd.f32 %v702_v30, %v1567_v41  ;;  %v704_v32 = vpop.f32.mrb[15].mxu0  ;;  %v752_v23 = vpop.f32.mrb[15].mxu1  ;;  %v778_v12 = vmax.f32 %v729_v60, 0.0  ;;  %v741_v33 = vadd.f32 %v1615_v6, %v582_v18 }
 0x204   :  { %v896_v35 = vmul.f32 %v1573_v43, %v768_v53  ;;  %v705_v16 = vadd.f32 %v704_v32, %v1567_v41  ;;  %v774_v41 = vmax.f32 %v717_v47, 0.0  ;;  %v903_v14 = vmul.f32 %v1619_v7, %v775_v3  ;;  %v592_v17 = vpop.permute.xlu0 %591 }
 0x205   :  { %v920_v48 = vadd.f32 %v919_v24, %v895_v42  ;;  %v769_v57 = vmax.f32 %v703_v39, 0.0  ;;  %v779_v4 = vmax.f32 %v733_v56, 0.0  ;;  %v745_v22 = vadd.f32 %v744_v13, %v587_v63 }
 0x206   :  { %v941_v50 = vadd.f32 %v940_v28, %v896_v35  ;;  %v770_v58 = vmax.f32 %v705_v16, 0.0  ;;  %v902_v20 = vmul.f32 %v1601_v29, %v774_v41  ;;  %v904_v46 = vmul.f32 %v1619_v7, %v776_v54  ;;  %v871_v29 = vpop.permute.xlu1 %870 }
 0x207   :  { %v897_v43 = vmul.f32 %v1577_v45, %v769_v57  ;;  %v780_v8 = vmax.f32 %v735_v37, 0.0  ;;  %v747_v40 = vadd.f32 %v746_v15, %v587_v63  ;;  %v905_v24 = vmul.f32 %v861_v34, %v777_v55 }
 0x208   :  { %v898_v10 = vmul.f32 %v1577_v45, %v770_v58  ;;  %v739_v45 = vadd.f32 %v1611_v51, %v582_v18  ;;  %v751_v26 = vadd.f32 %v750_v31, %v592_v17  ;;  %v906_v28 = vmul.f32 %v861_v34, %v778_v12  ;;  %v876_v15 = vpop.permute.xlu0 %875 }
 0x209   :  { %v921_v1 = vadd.f32 %v920_v48, %v897_v43  ;;  %v782_v53 = vmax.f32 %v741_v33, 0.0  ;;  %v753_v18 = vadd.f32 %v752_v23, %v592_v17  ;;  %v907_v30 = vmul.f32 %v866_v5, %v779_v4 }
 0x20a   :  { %v942_v19 = vadd.f32 %v941_v50, %v898_v10  ;;  %v781_v51 = vmax.f32 %v739_v45, 0.0  ;;  %v783_v61 = vmax.f32 %v745_v22, 0.0  ;;  %v908_v13 = vmul.f32 %v866_v5, %v780_v8  ;;  %v881_v57 = vpop.permute.xlu1 %880 }
 0x20b   :  { %v922_v27 = vadd.f32 %v921_v1, %v899_v0  ;;  %v784_v39 = vmax.f32 %v747_v40, 0.0  ;;  %v785_v7 = vmax.f32 %v751_v26, 0.0  ;;  %v910_v16 = vmul.f32 %v871_v29, %v782_v53 }
 0x20c   :  { %v943_v21 = vadd.f32 %v942_v19, %v900_v38  ;;  %v909_v47 = vmul.f32 %v871_v29, %v781_v51  ;;  %v786_v2 = vmax.f32 %v753_v18, 0.0  ;;  %v911_v48 = vmul.f32 %v876_v15, %v783_v61 }
 0x20d   :  { %v923_v11 = vadd.f32 %v922_v27, %v901_v9  ;;  %v912_v34 = vmul.f32 %v876_v15, %v784_v39  ;;  %v913_v52 = vmul.f32 %v881_v57, %v785_v7  ;;  %v958_v38 = vstv %s1684_s6 }
 0x20e   :  { %v944_v62 = vadd.f32 %v943_v21, %v902_v20  ;;  %v914_v50 = vmul.f32 %v881_v57, %v786_v2 }
 0x20f   :  { %v924_v25 = vadd.f32 %v923_v11, %v903_v14 }
 0x210   :  { %v945_v6 = vadd.f32 %v944_v62, %v904_v46 }
 0x211   :  { %v925_v42 = vadd.f32 %v924_v25, %v905_v24 }
 0x212   :  { %v946_v32 = vadd.f32 %v945_v6, %v906_v28 }
 0x213   :  { %v926_v35 = vadd.f32 %v925_v42, %v907_v30 }
 0x214   :  { %v947_v36 = vadd.f32 %v946_v32, %v908_v13 }
 0x215   :  { %v927_v31 = vadd.f32 %v926_v35, %v909_v47 }
 0x216   :  { %v948_v49 = vadd.f32 %v947_v36, %v910_v16 }
 0x217   :  { %v928_v23 = vadd.f32 %v927_v31, %v911_v48 }
 0x218   :  { %v949_v58 = vadd.f32 %v948_v49, %v912_v34 }
 0x219   :  { %v929_v59 = vadd.f32 %v928_v23, %v913_v52 }
 0x21a   :  { %v950_v44 = vadd.f32 %v949_v58, %v914_v50 }
 0x21b   :  { %v930_v43 = vrot.slane %v929_v59, 4 }
 0x21c   :  { %v951_v63 = vrot.slane %v950_v44, 4 }
 0x21d   :  { %v931_v41 = vadd.f32 %v930_v43, %v929_v59 }
 0x21e   :  { %v952_v60 = vadd.f32 %v951_v63, %v950_v44 }
 0x21f   :  { %v932_v10 = vrot.slane %v931_v41, 2 }
 0x220   :  { %v953_v0 = vrot.slane %v952_v60, 2 }
 0x221   :  { %v933_v3 = vadd.f32 %v932_v10, %v931_v41 }
 0x222   :  { %v954_v56 = vadd.f32 %v953_v0, %v952_v60 }
 0x223   :  { %v934_v1 = vrot.slane %v933_v3, 1 }
 0x224   :  { %v955_v5 = vrot.slane %v954_v56, 1 }
 0x225   :  { %v935_v54 = vadd.f32 %v934_v1, %v933_v3 }
 0x226   :  { %v956_v37 = vadd.f32 %v955_v5, %v954_v56 }
 0x227   :  { %v959_v9 = vadd.f32 %v958_v38, %v935_v54 }
 0x228   :  { %v960_v19 = vadd.f32 %v958_v38, %v956_v37 }
 0x229   :  { %v987_v55 = vsel %vm968_vm0, %v959_v9, 0.0 }
 0x22a   :  { %961 = vmax.xlane.f32.xlu0 %v960_v19 }
 0x22e   :  { %988 = vadd.xlane.f32.xlu0 %v987_v55 }
 0x2b7   :  { %v962_v45 = vpop.xlane.xlu0 %961 }
 0x2b8   :  { %1064 = vpush %v962_v45 }
 0x2bb   :  { %v989_v40 = vpop.xlane.xlu0 %988 }
 0x2bc   :  { %v990_v62 = vrot.slane %v989_v40, 4 }
 0x2be   :  { %v991_v24 = vadd.f32 %v990_v62, %v989_v40 }
 0x2c0   :  { %v992_v25 = vrot.slane %v991_v24, 2 }
 0x2c2   :  { %v993_v26 = vadd.f32 %v992_v25, %v991_v24 }
 0x2c4   :  { %v994_v29 = vrot.slane %v993_v26, 1 }
 0x2c6   :  { %v995_v6 = vadd.f32 %v994_v29, %v993_v26 }
 0x2e9   :  { %s1662_s13 = spop %1064 }
 0x2ea   :  { %v964_v27 = vstv %s1662_s13 }
 0x2eb   :  { %v965_v20 = vsub.f32 %v960_v19, %v964_v27 }
 0x2ed   :  { %v966_v12 = vmul.f32 1.442695, %v965_v20 }
 0x2ef   :  { %1094 = vpow2.f32 %v966_v12 }
 0x2f9   :  { %v1095_v33 = vpop.eup %1094 }
 0x2fa   :  { %v969_v21 = vsel %vm968_vm0, %v1095_v33, 0.0 }
 0x2fb   :  { %970 = vadd.xlane.f32.xlu1 %v969_v21 }
 0x388   :  { %v971_v14 = vpop.xlane.xlu1 %970 }
 0x389   :  { %v972_v4 = vrot.slane %v971_v14, 4 }
 0x38b   :  { %v973_v22 = vadd.f32 %v972_v4, %v971_v14 }
 0x38d   :  { %v974_v11 = vrot.slane %v973_v22, 2 }
 0x38f   :  { %v975_v17 = vadd.f32 %v974_v11, %v973_v22 }
 0x391   :  { %v976_v46 = vrot.slane %v975_v17, 1 }
 0x393   :  { %v977_v8 = vadd.f32 %v976_v46, %v975_v17 }
 0x395   :  { %1066 = vpush %v977_v8 }
 0x3c6   :  { %s1067_s6 = spop %1066 }
 0x3c7   :  { %s981_s14 = smul.f32 0.0078125, %s1067_s6 }
 0x3c9   :  { %v982_v51 = vstv %s981_s14 }
 0x3ca   :  { %1096 = vlog2.f32 %v982_v51 }
 0x3d4   :  { %v1097_v28 = vpop.eup %1096 }
 0x3d5   :  { %v984_v53 = vmul.f32 0.6931472, %v1097_v28 }
 0x3d7   :  { %1068 = vpush %v984_v53 }
 0x3d8   :  { %1070 = vpush %v995_v6 }
 0x408   :  { %s1069_s15 = spop %1068 }
 0x409   :  { %s986_s0 = sadd.f32 %s1069_s15, %s1662_s13  ;;  %s1071_s16 = spop %1070 }
 0x40a   :  { %s999_s17 = smul.f32 0.0078125, %s1071_s16 }
 0x40c   :  { %s1000_s18 = ssub.f32 %s999_s17, %s986_s0 }
 0x40e   :  { %1002 = sst [smem:[#allocation3]] %s1000_s18 }
 0x40f   :  { %1107 = shalt.err (!%p1104_p2)
}
 0x410   :  { %s1113_s25 = smov [#allocation3]  }
 0x411   :  { %1010 = dma.smem_to_hbm %s1113_s25, 16, %s1685_s7, [#allocation4]  }
 0x412   :  { %1108 = dma.done.wait [#allocation4], 16  }
 0x413   :  { %1109 = vsyncadd [#allocation4], 4294967280 }
 0x414   :  { %1014 = sfence }
 0x415   :  { %1015 = vsyncpa [#allocation4], 1 }

</bundles_post_ra>
